<compile_context>
chip_gen: v5e
topology: v5e:2x2
jax: 0.10.0
libtpu: 0.0.40
codegen_flags: <defaults>
</compile_context>

<pallas_src>
import functools

import jax
import jax.numpy as jnp
from jax import lax
from jax.experimental import pallas as pl
from jax.experimental.pallas import tpu as pltpu

LN_EPS = 1e-5  # torch.nn.LayerNorm default
_MIB = 1024 * 1024


def _mlp_kernel(x_ref, w1_ref, b1_ref, g_ref, beta_ref, w2row_ref, b2_ref, o_ref,
                *, compute_dtype):
    # x tile: (tile_b, num_input), streamed in its stored (HBM) dtype.
    x = x_ref[...]
    if x.dtype != compute_dtype:
        # In-kernel cast: free VPU work hidden under the matmul; avoids an
        # extra wrapper-side HBM pass over x.
        x = x.astype(compute_dtype)

    # Linear 1 on the MXU; accumulation always in f32.
    h = jnp.dot(x, w1_ref[...], preferred_element_type=jnp.float32) + b1_ref[...]

    # LayerNorm over the hidden (lane) dim, elementwise affine
    # (torch semantics: biased variance, rsqrt(var + eps)).
    mean = jnp.mean(h, axis=-1, keepdims=True)
    centered = h - mean
    var = jnp.mean(centered * centered, axis=-1, keepdims=True)
    hn = centered * lax.rsqrt(var + LN_EPS)
    hn = hn * g_ref[...] + beta_ref[...]

    # Activation (ReLU).
    a = jnp.maximum(hn, 0.0)

    # Linear 2 (n_hidden -> 1): N=1 matmul wastes the MXU, so do it on the
    # VPU (multiply) + XLU (lane reduction) against w2 stored as a row,
    # plus the SMEM scalar bias.
    out = jnp.sum(a * w2row_ref[...], axis=-1, keepdims=True) + b2_ref[0, 0]
    o_ref[...] = out.astype(o_ref.dtype)


def _round_down(x, m):
    return (x // m) * m


def _vmem_capacity_bytes():
    try:
        return int(pltpu.get_tpu_info().vmem_capacity_bytes)
    except Exception:
        return 64 * _MIB  # conservative (v7x-sized) fallback


def neural_network_forward(x, params, *, use_bf16=False, tile_b=None):
    """Forward pass of NeuralNetwork. x: (B, ...); flattened like nn.Flatten()."""
    B = x.shape[0]
    x2d = x.reshape(B, -1)
    num_input = x2d.shape[1]
    w1, b1, g, beta, w2, b2 = params
    n_hidden = w1.shape[1]

    compute_dtype = jnp.bfloat16 if use_bf16 else jnp.float32
    dma_bytes = x2d.dtype.itemsize                 # x streamed in stored dtype
    w_bytes = jnp.dtype(compute_dtype).itemsize

    # ---- generation-aware budgets ----------------------------------------
    vmem_cap = _vmem_capacity_bytes()
    big_vmem = vmem_cap >= 96 * _MIB               # v5e/v6e (128 MiB) vs v7x (64 MiB)
    x_budget = (24 if big_vmem else 12) * _MIB     # double-buffered x-tile budget
    limit_cap = (96 if big_vmem else 48) * _MIB

    # ---- batch tile --------------------------------------------------------
    align = 16 if use_bf16 else 8                  # bf16 packs 16 sublanes / vreg
    if tile_b is None:
        # Size tile_b so double-buffered x tiles + live f32 intermediates fit
        # the per-generation budget; cap at 8192 rows.
        per_row = 2 * num_input * dma_bytes + 4 * n_hidden * 4 + 8
        tile_b = max(align, min(8192, x_budget // per_row))
    if B <= align:
        tile_b = B                                 # one full block (exempt from 8-row rule)
    else:
        tile_b = max(align, min(_round_down(int(tile_b), align), _round_down(B, align)))
    # Ragged last tile: Pallas masks the out-of-range stores; garbage rows
    # read past B never reach HBM.
    grid = (pl.cdiv(B, tile_b),)

    # ---- cost & VMEM hints -------------------------------------------------
    param_bytes = (w1.size * w_bytes
                   + (b1.size + g.size + beta.size + w2.size + b2.size) * 4)
    cost = pl.CostEstimate(
        flops=2 * B * num_input * n_hidden + 10 * B * n_hidden,
        transcendentals=B,                         # one rsqrt per row
        bytes_accessed=B * num_input * dma_bytes + param_bytes + B * 4,
    )

    w1_bytes = num_input * n_hidden * w_bytes
    vmem_need = (2 * tile_b * num_input * dma_bytes    # double-buffered x tiles
                 + 2 * tile_b * 4                      # double-buffered out tiles
                 + 4 * tile_b * n_hidden * 4           # live f32 intermediates
                 + 2 * w1_bytes                        # weight (worst case 2 bufs)
                 + 16 * n_hidden * 4 + 64 * 1024)
    vmem_limit = int(min(max(int(vmem_need * 1.5), 32 * _MIB), limit_cap))

    # Single-buffer the resident w1 only when the second pipeline buffer would
    # actually cost meaningful VMEM (v7x headroom); keep defaults otherwise.
    if w1_bytes > 1 * _MIB:
        w1_spec = pl.BlockSpec((num_input, n_hidden), lambda i: (0, 0),
                               pipeline_mode=pl.Buffered(1))
    else:
        w1_spec = pl.BlockSpec((num_input, n_hidden), lambda i: (0, 0))

    kernel = functools.partial(_mlp_kernel, compute_dtype=compute_dtype)

    out = pl.pallas_call(
        kernel,
        out_shape=jax.ShapeDtypeStruct((B, 1), jnp.float32),
        grid=grid,
        in_specs=[
            pl.BlockSpec((tile_b, num_input), lambda i: (i, 0)),   # x tile (streamed)
            w1_spec,                                               # w1 (resident)
            pl.BlockSpec((1, n_hidden), lambda i: (0, 0)),         # b1
            pl.BlockSpec((1, n_hidden), lambda i: (0, 0)),         # gamma
            pl.BlockSpec((1, n_hidden), lambda i: (0, 0)),         # beta
            pl.BlockSpec((1, n_hidden), lambda i: (0, 0)),         # w2 as a row
            pl.BlockSpec(memory_space=pltpu.MemorySpace.SMEM),     # b2 scalar
        ],
        out_specs=pl.BlockSpec((tile_b, 1), lambda i: (i, 0)),
        compiler_params=pltpu.CompilerParams(
            dimension_semantics=("parallel",),
            vmem_limit_bytes=vmem_limit,
        ),
        cost_estimate=cost,
    )(
        x2d,
        w1.astype(compute_dtype),                     # tiny one-off cast (param)
        b1.reshape(1, n_hidden).astype(jnp.float32),
        g.reshape(1, n_hidden).astype(jnp.float32),
        beta.reshape(1, n_hidden).astype(jnp.float32),
        w2.reshape(1, n_hidden).astype(jnp.float32),
        b2.reshape(1, 1).astype(jnp.float32),
    )
    return out


def init_params(key, num_input, n_hidden):
    """Deterministic init matching the module's parameter shapes
    (torch-style uniform fan-in bounds; LayerNorm gamma=1, beta=0)."""
    k1, k2, k3, k4 = jax.random.split(key, 4)
    bound1 = 1.0 / jnp.sqrt(num_input)
    w1 = jax.random.uniform(k1, (num_input, n_hidden), jnp.float32, -bound1, bound1)
    b1 = jax.random.uniform(k2, (n_hidden,), jnp.float32, -bound1, bound1)
    g = jnp.ones((n_hidden,), jnp.float32)
    beta = jnp.zeros((n_hidden,), jnp.float32)
    bound2 = 1.0 / jnp.sqrt(n_hidden)
    w2 = jax.random.uniform(k3, (n_hidden, 1), jnp.float32, -bound2, bound2)
    b2 = jax.random.uniform(k4, (1,), jnp.float32, -bound2, bound2)
    return (w1, b1, g, beta, w2, b2)


def reference_forward(x, params):
    B = x.shape[0]
    x2d = x.reshape(B, -1).astype(jnp.float32)
    w1, b1, g, beta, w2, b2 = params
    h = x2d @ w1 + b1
    mean = jnp.mean(h, axis=-1, keepdims=True)
    var = jnp.mean((h - mean) ** 2, axis=-1, keepdims=True)
    hn = (h - mean) / jnp.sqrt(var + LN_EPS) * g + beta
    a = jnp.maximum(hn, 0.0)
    return a @ w2 + b2


if __name__ == "__main__":
    key = jax.random.PRNGKey(0)
    kx, kp, kx2, kx3 = jax.random.split(key, 4)

    # Small shapes consistent with the module: batch=8, input features = 4*16 = 64.
    batch, c, f = 8, 4, 16
    num_input = c * f
    n_hidden = 32

    x = jax.random.normal(kx, (batch, c, f), jnp.float32)
    params = init_params(kp, num_input, n_hidden)

    # 1) f32 path (exact module semantics), single exact tile.
    out = jax.block_until_ready(neural_network_forward(x, params))
    ref = reference_forward(x, params)
    assert out.shape == (batch, 1)
    assert jnp.allclose(out, ref, atol=1e-5, rtol=1e-5), "f32 mismatch vs reference"

    # 2) Multi-tile grid with a ragged last block (B=40, TILE_B=16 -> 3 tiles,
    #    last tile masked) -- no host-side padding pass over x.
    xb = jax.random.normal(kx2, (40, c, f), jnp.float32)
    outb = jax.block_until_ready(neural_network_forward(xb, params, tile_b=16))
    refb = reference_forward(xb, params)
    assert outb.shape == (40, 1)
    assert jnp.allclose(outb, refb, atol=1e-5, rtol=1e-5), "tiled mismatch vs reference"

    # 3) Batch not a multiple of the sublane count (B=13) -> ragged edge store.
    xc = jax.random.normal(kx3, (13, c, f), jnp.float32)
    outc = jax.block_until_ready(neural_network_forward(xc, params))
    refc = reference_forward(xc, params)
    assert outc.shape == (13, 1)
    assert jnp.allclose(outc, refc, atol=1e-5, rtol=1e-5), "ragged mismatch vs reference"

    # 4) bf16 MXU operands (in-kernel cast of x, f32 accumulation); looser tol.
    outh = jax.block_until_ready(neural_network_forward(x, params, use_bf16=True))
    assert jnp.allclose(outh, ref, atol=5e-2, rtol=5e-2), "bf16 mismatch vs reference"

    print("KERNEL_OK")
</pallas_src>

<mosaic_0001>
module attributes {stable_mosaic.version = 11 : i64} {
  func.func @_mlp_kernel(%arg0: i32, %arg1: memref<8x64xf32, #tpu.memory_space<vmem>>, %arg2: memref<64x32xf32, #tpu.memory_space<vmem>>, %arg3: memref<1x32xf32, #tpu.memory_space<vmem>>, %arg4: memref<1x32xf32, #tpu.memory_space<vmem>>, %arg5: memref<1x32xf32, #tpu.memory_space<vmem>>, %arg6: memref<1x32xf32, #tpu.memory_space<vmem>>, %arg7: memref<1x1xf32, #tpu.memory_space<smem>>, %arg8: memref<8x1xf32, #tpu.memory_space<vmem>>) attributes {dimension_semantics = [#tpu.dimension_semantics<parallel>], iteration_bounds = array<i64: 1>, scalar_prefetch = 0 : i64, scratch_operands = 0 : i64, tpu.core_type = #tpu.core_type<tc>, window_params = [{transform_indices = @transform_0, window_bounds = array<i64: 8, 64>}, {pipeline_mode = #tpu.pipeline_mode<synchronous>, transform_indices = @transform_1, window_bounds = array<i64: 64, 32>}, {pipeline_mode = #tpu.pipeline_mode<synchronous>, transform_indices = @transform_2, window_bounds = array<i64: 1, 32>}, {pipeline_mode = #tpu.pipeline_mode<synchronous>, transform_indices = @transform_3, window_bounds = array<i64: 1, 32>}, {pipeline_mode = #tpu.pipeline_mode<synchronous>, transform_indices = @transform_4, window_bounds = array<i64: 1, 32>}, {pipeline_mode = #tpu.pipeline_mode<synchronous>, transform_indices = @transform_5, window_bounds = array<i64: 1, 32>}, {transform_indices = @transform_6, window_bounds = array<i64: 1, 1>}, {transform_indices = @transform_7, window_bounds = array<i64: 8, 1>}]} {
    %c0 = arith.constant 0 : index
    %c0_0 = arith.constant 0 : index
    %0 = vector.load %arg1[%c0, %c0_0] : memref<8x64xf32, #tpu.memory_space<vmem>>, vector<8x64xf32>
    %c0_1 = arith.constant 0 : index
    %c0_2 = arith.constant 0 : index
    %1 = vector.load %arg2[%c0_1, %c0_2] : memref<64x32xf32, #tpu.memory_space<vmem>>, vector<64x32xf32>
    %cst = arith.constant dense<0.000000e+00> : vector<8x32xf32>
    %2 = tpu.matmul %0, %1, %cst {dimension_numbers = #tpu.dot_dimension_numbers<[1], [0], [0], [1], [0, 0, 1, 1], [], []>} : vector<8x64xf32>, vector<64x32xf32>, vector<8x32xf32> -> vector<8x32xf32>
    %c0_3 = arith.constant 0 : index
    %c0_4 = arith.constant 0 : index
    %3 = vector.load %arg3[%c0_3, %c0_4] : memref<1x32xf32, #tpu.memory_space<vmem>>, vector<1x32xf32>
    %4 = vector.broadcast %3 : vector<1x32xf32> to vector<8x32xf32>
    %5 = arith.addf %2, %4 : vector<8x32xf32>
    %cst_5 = arith.constant dense<0.000000e+00> : vector<8xf32>
    %6 = vector.multi_reduction <add>, %5, %cst_5 [1] : vector<8x32xf32> to vector<8xf32>
    %7 = vector.shape_cast %6 : vector<8xf32> to vector<8x1xf32>
    %cst_6 = arith.constant 3.200000e+01 : f32
    %8 = vector.broadcast %cst_6 : f32 to vector<8x1xf32>
    %9 = arith.divf %7, %8 : vector<8x1xf32>
    %10 = vector.broadcast %9 : vector<8x1xf32> to vector<8x32xf32>
    %11 = arith.subf %5, %10 : vector<8x32xf32>
    %12 = arith.mulf %11, %11 : vector<8x32xf32>
    %cst_7 = arith.constant dense<0.000000e+00> : vector<8xf32>
    %13 = vector.multi_reduction <add>, %12, %cst_7 [1] : vector<8x32xf32> to vector<8xf32>
    %14 = vector.shape_cast %13 : vector<8xf32> to vector<8x1xf32>
    %cst_8 = arith.constant 3.200000e+01 : f32
    %15 = vector.broadcast %cst_8 : f32 to vector<8x1xf32>
    %16 = arith.divf %14, %15 : vector<8x1xf32>
    %cst_9 = arith.constant 9.99999974E-6 : f32
    %17 = vector.broadcast %cst_9 : f32 to vector<8x1xf32>
    %18 = arith.addf %16, %17 : vector<8x1xf32>
    %19 = math.rsqrt %18 : vector<8x1xf32>
    %20 = vector.broadcast %19 : vector<8x1xf32> to vector<8x32xf32>
    %21 = arith.mulf %11, %20 : vector<8x32xf32>
    %c0_10 = arith.constant 0 : index
    %c0_11 = arith.constant 0 : index
    %22 = vector.load %arg4[%c0_10, %c0_11] : memref<1x32xf32, #tpu.memory_space<vmem>>, vector<1x32xf32>
    %23 = vector.broadcast %22 : vector<1x32xf32> to vector<8x32xf32>
    %24 = arith.mulf %21, %23 : vector<8x32xf32>
    %c0_12 = arith.constant 0 : index
    %c0_13 = arith.constant 0 : index
    %25 = vector.load %arg5[%c0_12, %c0_13] : memref<1x32xf32, #tpu.memory_space<vmem>>, vector<1x32xf32>
    %26 = vector.broadcast %25 : vector<1x32xf32> to vector<8x32xf32>
    %27 = arith.addf %24, %26 : vector<8x32xf32>
    %cst_14 = arith.constant 0.000000e+00 : f32
    %28 = vector.broadcast %cst_14 : f32 to vector<8x32xf32>
    %29 = arith.maximumf %27, %28 : vector<8x32xf32>
    %c0_15 = arith.constant 0 : index
    %c0_16 = arith.constant 0 : index
    %30 = vector.load %arg6[%c0_15, %c0_16] : memref<1x32xf32, #tpu.memory_space<vmem>>, vector<1x32xf32>
    %31 = vector.broadcast %30 : vector<1x32xf32> to vector<8x32xf32>
    %32 = arith.mulf %29, %31 : vector<8x32xf32>
    %cst_17 = arith.constant dense<0.000000e+00> : vector<8xf32>
    %33 = vector.multi_reduction <add>, %32, %cst_17 [1] : vector<8x32xf32> to vector<8xf32>
    %34 = vector.shape_cast %33 : vector<8xf32> to vector<8x1xf32>
    %c0_18 = arith.constant 0 : index
    %c0_19 = arith.constant 0 : index
    %35 = memref.load %arg7[%c0_18, %c0_19] : memref<1x1xf32, #tpu.memory_space<smem>>
    %36 = vector.broadcast %35 : f32 to vector<8x1xf32>
    %37 = arith.addf %34, %36 : vector<8x1xf32>
    %c0_20 = arith.constant 0 : index
    %c0_21 = arith.constant 0 : index
    %38 = vector.load %arg8[%c0_20, %c0_21] : memref<8x1xf32, #tpu.memory_space<vmem>>, vector<8x1xf32>
    tpu.vector_store %arg8[%c0_20, %c0_21], %37 {strides = array<i32>} : memref<8x1xf32, #tpu.memory_space<vmem>>, vector<8x1xf32>,
    return
  }
  func.func @transform_0(%arg0: i32) -> (i32, i32) {
    %c0_i32 = arith.constant 0 : i32
    %c0_i32_0 = arith.constant 0 : i32
    return %arg0, %c0_i32 : i32, i32
  }
  func.func @transform_1(%arg0: i32) -> (i32, i32) {
    %c0_i32 = arith.constant 0 : i32
    %c0_i32_0 = arith.constant 0 : i32
    %c0_i32_1 = arith.constant 0 : i32
    return %c0_i32, %c0_i32_0 : i32, i32
  }
  func.func @transform_2(%arg0: i32) -> (i32, i32) {
    %c0_i32 = arith.constant 0 : i32
    %c0_i32_0 = arith.constant 0 : i32
    %c0_i32_1 = arith.constant 0 : i32
    return %c0_i32, %c0_i32_0 : i32, i32
  }
  func.func @transform_3(%arg0: i32) -> (i32, i32) {
    %c0_i32 = arith.constant 0 : i32
    %c0_i32_0 = arith.constant 0 : i32
    %c0_i32_1 = arith.constant 0 : i32
    return %c0_i32, %c0_i32_0 : i32, i32
  }
  func.func @transform_4(%arg0: i32) -> (i32, i32) {
    %c0_i32 = arith.constant 0 : i32
    %c0_i32_0 = arith.constant 0 : i32
    %c0_i32_1 = arith.constant 0 : i32
    return %c0_i32, %c0_i32_0 : i32, i32
  }
  func.func @transform_5(%arg0: i32) -> (i32, i32) {
    %c0_i32 = arith.constant 0 : i32
    %c0_i32_0 = arith.constant 0 : i32
    %c0_i32_1 = arith.constant 0 : i32
    return %c0_i32, %c0_i32_0 : i32, i32
  }
  func.func @transform_6(%arg0: i32) -> (i32, i32) {
    %c0_i32 = arith.constant 0 : i32
    %c0_i32_0 = arith.constant 0 : i32
    %c0_i32_1 = arith.constant 0 : i32
    return %c0_i32, %c0_i32_0 : i32, i32
  }
  func.func @transform_7(%arg0: i32) -> (i32, i32) {
    %c0_i32 = arith.constant 0 : i32
    %c0_i32_0 = arith.constant 0 : i32
    return %arg0, %c0_i32 : i32, i32
  }
}

</mosaic_0001>

<bundles_post_ra>
// kernel: tpu_custom_call.1
= control target key start
LH: loop header
LB: loop body
LE: loop exit
PB: predicated region body
PF: predicated region fallthrough
CT: control target
= control target key end

     0   :  { %vm40_vm0 = vcmask 523264   ;;  %vm64_vm1 = vcmask 261120   ;;  %v132_v13 = vmov 32.0   ;;  %vm116_vm6 = vcmask 7168   ;;  %s221_s1 = inlined_call_operand.vmem [shape: f32[64,32], index: 1, kind: input, shape index: {}]   ;;  %s222_s2 = inlined_call_operand.vmem [shape: f32[1,32], index: 2, kind: input, shape index: {}]   ;;  %s223_s0 = inlined_call_operand.vmem [shape: f32[8,64], index: 0, kind: input, shape index: {}]   ;;  %s224_s3 = inlined_call_operand.vmem [shape: f32[1,32], index: 3, kind: input, shape index: {}]   ;;  %s225_s4 = inlined_call_operand.vmem [shape: f32[1,32], index: 4, kind: input, shape index: {}]   ;;  %s226_s5 = inlined_call_operand.vmem [shape: f32[1,32], index: 5, kind: input, shape index: {}]   ;;  %s227_s6 = inlined_call_operand.<no memory space> [shape: f32[1,1], index: 6, kind: input, shape index: {}]   ;;  %s228_s7 = inlined_call_operand.vmem [shape: f32[8,1], index: 7, kind: output, shape index: {}]  }
   0x1   :  { %v35_v0 = vld [vmem:[%s221_s1 + $0x38] sm:$0xff]  ;;  %v34_v1 = vld [vmem:[%s221_s1 + $0x30] sm:$0xff]  ;;  %v33_v2 = vld [vmem:[%s221_s1 + $0x28] sm:$0xff]  ;;  %128 = vrcp.f32 %v132_v13  ;;  %v114_v44 = vstv %s227_s6 }
   0x2   :  { %52 = vmatpush.msra.mxu0 %v35_v0  ;;  %v32_v3 = vld [vmem:[%s221_s1 + $0x20] sm:$0xff]  ;;  %v31_v4 = vld [vmem:[%s221_s1 + $0x18] sm:$0xff]  ;;  %v30_v5 = vld [vmem:[%s221_s1 + $0x10] sm:$0xff] }
   0x3   :  { %v29_v6 = vld [vmem:[%s221_s1 + $0x8] sm:$0xff]  ;;  %v28_v7 = vld [vmem:[%s221_s1] sm:$0xff] }
   0x4   :  { %53 = vmatpush.msra.mxu0 %v34_v1  ;;  %v27_v8 = vld [vmem:[%s223_s0] sm:$0xff] }
   0x5   :  { %v124_v9 = vld [vmem:[%s222_s2] ss:$0 sm:$0xff] }
   0x6   :  { %54 = vmatpush.msra.mxu0 %v33_v2  ;;  %v125_v34 = vld [vmem:[%s224_s3] ss:$0 sm:$0xff] }
   0x7   :  { %v129_v14 = vpop.eup %128  ;;  %v126_v37 = vld [vmem:[%s225_s4] ss:$0 sm:$0xff] }
   0x8   :  { %55 = vmatpush.msra.mxu0 %v32_v3  ;;  %v69_v15 = vmul.f32 32.0, %v129_v14  ;;  %vm73_vm2 = vweird.f32 %v129_v14  ;;  %v127_v40 = vld [vmem:[%s226_s5] ss:$0 sm:$0xff] }
   0xa   :  { %56 = vmatpush.msra.mxu0 %v31_v4  ;;  %v70_v16 = vsub.f32 1.0, %v69_v15 }
   0xc   :  { %57 = vmatpush.msra.mxu0 %v30_v5  ;;  %v71_v17 = vmul.f32 %v129_v14, %v70_v16 }
   0xe   :  { %58 = vmatpush.msra.mxu0 %v29_v6  ;;  %v72_v18 = vadd.f32 %v129_v14, %v71_v17 }
  0x10   :  { %59 = vmatpush.msra.mxu0 %v28_v7  ;;  %v74_v19 = vsel %vm73_vm2, %v129_v14, %v72_v18 }
  0x11   :  { %122 = vmatmul.msk.f32.vlgmr.msra.gmra.mxu0 %vm40_vm0, %v27_v8 }
  0x8e   :  { %v61_v10 = vpop.f32.mrf.mxu0 }
  0x8f   :  { %v62_v11 = vadd.f32 %v124_v9, %v61_v10 }
  0x91   :  { %v65_v12 = vsel %vm64_vm1, %v62_v11, 0.0 }
  0x92   :  { %66 = vadd.xlane.f32.xlu0 %v65_v12 }
 0x105   :  { %v67_v20 = vpop.xlane.xlu0 %66 }
 0x106   :  { %v75_v21 = vmul.f32 %v74_v19, %v67_v20 }
 0x108   :  { %v76_v22 = vsub.f32 %v62_v11, %v75_v21 }
 0x10a   :  { %v77_v23 = vmul.f32 %v76_v22, %v76_v22 }
 0x10c   :  { %v78_v24 = vsel %vm64_vm1, %v77_v23, 0.0 }
 0x10d   :  { %79 = vadd.xlane.f32.xlu0 %v78_v24 }
 0x180   :  { %v80_v25 = vpop.xlane.xlu0 %79 }
 0x181   :  { %v81_v26 = vmul.f32 %v80_v25, %v74_v19 }
 0x183   :  { %v82_v27 = vadd.f32 1e-05, %v81_v26 }
 0x185   :  { %130 = vrsqrt.f32 %v82_v27  ;;  %vm89_vm4 = vweird.f32 %v82_v27 }
 0x18b   :  { %v131_v28 = vpop.eup %130 }
 0x18c   :  { %v84_v29 = vmul.f32 %v131_v28, %v82_v27  ;;  %vm90_vm3 = vweird.f32 %v131_v28 }
 0x18d   :  { %vm91_vm5 = vmor %vm89_vm4, %vm90_vm3 }
 0x18e   :  { %v85_v30 = vmul.f32 %v131_v28, %v84_v29 }
 0x190   :  { %v86_v31 = vmul.f32 0.5, %v85_v30 }
 0x192   :  { %v87_v32 = vsub.f32 1.5, %v86_v31 }
 0x194   :  { %v88_v33 = vmul.f32 %v131_v28, %v87_v32 }
 0x196   :  { %v92_v35 = vsel %vm91_vm5, %v131_v28, %v88_v33 }
 0x197   :  { %v93_v36 = vmul.f32 %v92_v35, %v76_v22 }
 0x199   :  { %v98_v38 = vmul.f32 %v125_v34, %v93_v36 }
 0x19b   :  { %v103_v39 = vadd.f32 %v126_v37, %v98_v38 }
 0x19d   :  { %v104_v41 = vmax.f32 %v103_v39, 0.0 }
 0x19f   :  { %v109_v42 = vmul.f32 %v127_v40, %v104_v41 }
 0x1a1   :  { %v110_v43 = vsel %vm64_vm1, %v109_v42, 0.0 }
 0x1a2   :  { %111 = vadd.xlane.f32.xlu1 %v110_v43 }
 0x215   :  { %v112_v45 = vpop.xlane.xlu1 %111 }
 0x216   :  { %v115_v46 = vadd.f32 %v114_v44, %v112_v45 }
 0x218   :  { %117 = vst.msk [vmem:[%s228_s7] sm:$0xff] %vm116_vm6, %v115_v46 }

</bundles_post_ra>
